<compile_context>
chip_gen: v6e
topology: v6e:2x2x1
jax: 0.10.0
libtpu: 0.0.40
codegen_flags: <defaults>
</compile_context>

<pallas_src>
import functools

import jax
import jax.numpy as jnp
import numpy as np
from jax import lax
from jax.experimental import pallas as pl
from jax.experimental.pallas import tpu as pltpu


def _encoder_gru_kernel(idx_ref,       # VMEM (S*B, 1) int32   token ids
                        emb_proj_ref,  # VMEM (Vc, 3H) bf16    Emb @ W_ih^T + b_ih
                        w_hh_ref,      # VMEM (H, 3H)  bf16    W_hh^T
                        b_hh_ref,      # VMEM (1, 3H)  f32
                        out_ref,       # VMEM (S, B, H) f32
                        *, S, B, Vc, H):
    # ---- Input path (off the recurrence critical path): one MXU matmul produces the
    #      input-gate pre-activations gi = Emb[tok] @ W_ih^T + b_ih for ALL timesteps.
    vidx = lax.broadcasted_iota(jnp.int32, (S * B, Vc), 1)
    onehot = jnp.where(vidx == idx_ref[...], 1.0, 0.0).astype(jnp.bfloat16)   # (S*B, Vc)
    gi_all = jnp.dot(onehot, emb_proj_ref[...],
                     preferred_element_type=jnp.float32)                      # (S*B, 3H)

    w_hh = w_hh_ref[...]            # (H, 3H) bf16, hoisted out of the loop
    b_hh = b_hh_ref[...]            # (1, 3H) f32

    # ---- Recurrence: fully unrolled (S small & static).  Only one small
    #      (B,H)@(H,3H) MXU matmul per step sits on the serial chain.
    h = jnp.zeros((B, H), jnp.float32)
    for t in range(S):                                   # static unroll
        gi = gi_all[t * B:(t + 1) * B, :]                # (B, 3H)  static slice
        gh = jnp.dot(h.astype(jnp.bfloat16), w_hh,
                     preferred_element_type=jnp.float32) + b_hh               # (B, 3H)

        r = jax.nn.sigmoid(gi[:, 0:H] + gh[:, 0:H])
        z = jax.nn.sigmoid(gi[:, H:2 * H] + gh[:, H:2 * H])
        n = jnp.tanh(gi[:, 2 * H:3 * H] + r * gh[:, 2 * H:3 * H])
        h = (1.0 - z) * n + z * h                                             # (B, H)

        out_ref[t] = h                                   # write into resident VMEM block


def encoder_forward(inputs, emb_table, w_ih, w_hh, b_ih, b_hh):
    """Pallas version of Encoder.forward.

    inputs: (S, B) int token ids
    emb_table: (vocab, E); w_ih: (3H, E); w_hh: (3H, H); b_ih, b_hh: (3H,)
    returns: output (S, B, H), h_n (1, B, H)   -- same as torch.nn.GRU
    """
    S, B = inputs.shape
    Vc, _E = emb_table.shape
    H = w_hh.shape[1]

    # ---- Weight prep (once per call, not on the recurrence path):
    #      fuse Embedding with the GRU input projection -> per-token gate pre-activations.
    emb_proj = (emb_table.astype(jnp.float32) @ w_ih.astype(jnp.float32).T
                + b_ih.astype(jnp.float32)[None, :]).astype(jnp.bfloat16)     # (Vc, 3H)
    w_hh_t = jnp.transpose(w_hh).astype(jnp.bfloat16)                         # (H, 3H)
    b_hh2 = b_hh.astype(jnp.float32)[None, :]                                 # (1, 3H)
    idx = inputs.astype(jnp.int32).reshape(S * B, 1)                          # (S*B, 1)

    vmem = pl.BlockSpec(memory_space=pltpu.MemorySpace.VMEM)
    out = pl.pallas_call(
        functools.partial(_encoder_gru_kernel, S=S, B=B, Vc=Vc, H=H),
        out_shape=jax.ShapeDtypeStruct((S, B, H), jnp.float32),
        in_specs=[vmem, vmem, vmem, vmem],
        out_specs=vmem,
    )(idx, emb_proj, w_hh_t, b_hh2)

    return out, out[-1][None]                            # h_n: (1, B, H)


def reference_encoder(inputs, emb_table, w_ih, w_hh, b_ih, b_hh):
    """Pure-JAX transcription of Embedding + torch.nn.GRU (validation only)."""
    x = jnp.take(emb_table, inputs, axis=0).astype(jnp.float32)   # (S, B, E)
    H = w_hh.shape[1]
    B = inputs.shape[1]

    def cell(h, x_t):
        gi = x_t @ w_ih.T + b_ih
        gh = h @ w_hh.T + b_hh
        i_r, i_z, i_n = jnp.split(gi, 3, axis=-1)
        h_r, h_z, h_n = jnp.split(gh, 3, axis=-1)
        r = jax.nn.sigmoid(i_r + h_r)
        z = jax.nn.sigmoid(i_z + h_z)
        n = jnp.tanh(i_n + r * h_n)
        h_new = (1.0 - z) * n + z * h
        return h_new, h_new

    h0 = jnp.zeros((B, H), jnp.float32)
    h_last, outs = lax.scan(cell, h0, x)
    return outs, h_last[None]


if __name__ == "__main__":
    # Small shapes consistent with the module: seq=8, batch=2, vocab=64,
    # emb_dim=128 (lane-dense), hidden=32.
    S, B = 8, 2
    vocab_size, emb_dim, hidden_dim = 64, 128, 32

    root = jax.random.PRNGKey(0)
    k_tok, k_emb, k_wih, k_whh, k_bih, k_bhh = jax.random.split(root, 6)

    tokens = jax.random.randint(k_tok, (S, B), 0, vocab_size, dtype=jnp.int32)
    emb_table = 0.1 * jax.random.normal(k_emb, (vocab_size, emb_dim), jnp.float32)
    w_ih = 0.1 * jax.random.normal(k_wih, (3 * hidden_dim, emb_dim), jnp.float32)
    w_hh = 0.1 * jax.random.normal(k_whh, (3 * hidden_dim, hidden_dim), jnp.float32)
    b_ih = 0.1 * jax.random.normal(k_bih, (3 * hidden_dim,), jnp.float32)
    b_hh = 0.1 * jax.random.normal(k_bhh, (3 * hidden_dim,), jnp.float32)

    out, h_n = jax.jit(encoder_forward)(tokens, emb_table, w_ih, w_hh, b_ih, b_hh)
    jax.block_until_ready((out, h_n))

    ref_out, ref_hn = reference_encoder(tokens, emb_table, w_ih, w_hh, b_ih, b_hh)
    # bf16 MXU operands (single-pass native mode) => looser tolerance than f32-"highest".
    np.testing.assert_allclose(np.asarray(out), np.asarray(ref_out),
                               rtol=2e-2, atol=2e-2)
    np.testing.assert_allclose(np.asarray(h_n), np.asarray(ref_hn),
                               rtol=2e-2, atol=2e-2)
    print("KERNEL_OK")
</pallas_src>

<mosaic_0001>
module attributes {stable_mosaic.version = 11 : i64} {
  func.func @_encoder_gru_kernel(%arg0: memref<16x1xi32, #tpu.memory_space<vmem>>, %arg1: memref<64x96xbf16, #tpu.memory_space<vmem>>, %arg2: memref<32x96xbf16, #tpu.memory_space<vmem>>, %arg3: memref<1x96xf32, #tpu.memory_space<vmem>>, %arg4: memref<8x2x32xf32, #tpu.memory_space<vmem>>) attributes {dimension_semantics = [], scalar_prefetch = 0 : i64, scratch_operands = 0 : i64, tpu.core_type = #tpu.core_type<tc>} {
    %0 = tpu.iota {dimensions = array<i32: 1>} : vector<16x64xi32>
    %c0 = arith.constant 0 : index
    %c0_0 = arith.constant 0 : index
    %1 = vector.load %arg0[%c0, %c0_0] : memref<16x1xi32, #tpu.memory_space<vmem>>, vector<16x1xi32>
    %2 = vector.broadcast %1 : vector<16x1xi32> to vector<16x64xi32>
    %3 = arith.cmpi eq, %0, %2 : vector<16x64xi32>
    %cst = arith.constant 1.000000e+00 : f32
    %cst_1 = arith.constant 0.000000e+00 : f32
    %4 = vector.broadcast %cst : f32 to vector<16x64xf32>
    %5 = vector.broadcast %cst_1 : f32 to vector<16x64xf32>
    %6 = arith.select %3, %4, %5 : vector<16x64xi1>, vector<16x64xf32>
    %7 = arith.truncf %6 : vector<16x64xf32> to vector<16x64xbf16>
    %c0_2 = arith.constant 0 : index
    %c0_3 = arith.constant 0 : index
    %8 = vector.load %arg1[%c0_2, %c0_3] : memref<64x96xbf16, #tpu.memory_space<vmem>>, vector<64x96xbf16>
    %cst_4 = arith.constant dense<0.000000e+00> : vector<16x96xf32>
    %9 = tpu.matmul %7, %8, %cst_4 {dimension_numbers = #tpu.dot_dimension_numbers<[1], [0], [0], [1], [0, 0, 1, 1], [], []>} : vector<16x64xbf16>, vector<64x96xbf16>, vector<16x96xf32> -> vector<16x96xf32>
    %c0_5 = arith.constant 0 : index
    %c0_6 = arith.constant 0 : index
    %10 = vector.load %arg2[%c0_5, %c0_6] : memref<32x96xbf16, #tpu.memory_space<vmem>>, vector<32x96xbf16>
    %c0_7 = arith.constant 0 : index
    %c0_8 = arith.constant 0 : index
    %11 = vector.load %arg3[%c0_7, %c0_8] : memref<1x96xf32, #tpu.memory_space<vmem>>, vector<1x96xf32>
    %cst_9 = arith.constant 0.000000e+00 : f32
    %12 = vector.broadcast %cst_9 : f32 to vector<2x32xf32>
    %13 = vector.extract_strided_slice %9 {offsets = [0, 0], sizes = [2, 96], strides = [1, 1]} : vector<16x96xf32> to vector<2x96xf32>
    %14 = arith.truncf %12 : vector<2x32xf32> to vector<2x32xbf16>
    %cst_10 = arith.constant dense<0.000000e+00> : vector<2x96xf32>
    %15 = tpu.matmul %14, %10, %cst_10 {dimension_numbers = #tpu.dot_dimension_numbers<[1], [0], [0], [1], [0, 0, 1, 1], [], []>} : vector<2x32xbf16>, vector<32x96xbf16>, vector<2x96xf32> -> vector<2x96xf32>
    %16 = vector.broadcast %11 : vector<1x96xf32> to vector<2x96xf32>
    %17 = arith.addf %15, %16 : vector<2x96xf32>
    %18 = vector.extract_strided_slice %13 {offsets = [0, 0], sizes = [2, 32], strides = [1, 1]} : vector<2x96xf32> to vector<2x32xf32>
    %19 = vector.extract_strided_slice %17 {offsets = [0, 0], sizes = [2, 32], strides = [1, 1]} : vector<2x96xf32> to vector<2x32xf32>
    %20 = arith.addf %18, %19 : vector<2x32xf32>
    %21 = arith.negf %20 : vector<2x32xf32>
    %22 = math.exp %21 : vector<2x32xf32>
    %cst_11 = arith.constant 1.000000e+00 : f32
    %23 = vector.broadcast %cst_11 : f32 to vector<2x32xf32>
    %24 = arith.addf %23, %22 : vector<2x32xf32>
    %25 = arith.divf %23, %24 : vector<2x32xf32>
    %26 = vector.extract_strided_slice %13 {offsets = [0, 32], sizes = [2, 32], strides = [1, 1]} : vector<2x96xf32> to vector<2x32xf32>
    %27 = vector.extract_strided_slice %17 {offsets = [0, 32], sizes = [2, 32], strides = [1, 1]} : vector<2x96xf32> to vector<2x32xf32>
    %28 = arith.addf %26, %27 : vector<2x32xf32>
    %29 = arith.negf %28 : vector<2x32xf32>
    %30 = math.exp %29 : vector<2x32xf32>
    %cst_12 = arith.constant 1.000000e+00 : f32
    %31 = vector.broadcast %cst_12 : f32 to vector<2x32xf32>
    %32 = arith.addf %31, %30 : vector<2x32xf32>
    %33 = arith.divf %31, %32 : vector<2x32xf32>
    %34 = vector.extract_strided_slice %13 {offsets = [0, 64], sizes = [2, 32], strides = [1, 1]} : vector<2x96xf32> to vector<2x32xf32>
    %35 = vector.extract_strided_slice %17 {offsets = [0, 64], sizes = [2, 32], strides = [1, 1]} : vector<2x96xf32> to vector<2x32xf32>
    %36 = arith.mulf %25, %35 : vector<2x32xf32>
    %37 = arith.addf %34, %36 : vector<2x32xf32>
    %38 = math.tanh %37 : vector<2x32xf32>
    %cst_13 = arith.constant 1.000000e+00 : f32
    %39 = vector.broadcast %cst_13 : f32 to vector<2x32xf32>
    %40 = arith.subf %39, %33 : vector<2x32xf32>
    %41 = arith.mulf %40, %38 : vector<2x32xf32>
    %42 = arith.mulf %33, %12 : vector<2x32xf32>
    %43 = arith.addf %41, %42 : vector<2x32xf32>
    %c0_14 = arith.constant 0 : index
    %c0_15 = arith.constant 0 : index
    %c0_16 = arith.constant 0 : index
    %44 = vector.load %arg4[%c0_14, %c0_15, %c0_16] : memref<8x2x32xf32, #tpu.memory_space<vmem>>, vector<1x2x32xf32>
    %45 = vector.shape_cast %44 : vector<1x2x32xf32> to vector<2x32xf32>
    %46 = vector.shape_cast %43 : vector<2x32xf32> to vector<1x2x32xf32>
    tpu.vector_store %arg4[%c0_14, %c0_15, %c0_16], %46 {strides = array<i32>} : memref<8x2x32xf32, #tpu.memory_space<vmem>>, vector<1x2x32xf32>,
    %47 = vector.extract_strided_slice %9 {offsets = [2, 0], sizes = [2, 96], strides = [1, 1]} : vector<16x96xf32> to vector<2x96xf32>
    %48 = arith.truncf %43 : vector<2x32xf32> to vector<2x32xbf16>
    %cst_17 = arith.constant dense<0.000000e+00> : vector<2x96xf32>
    %49 = tpu.matmul %48, %10, %cst_17 {dimension_numbers = #tpu.dot_dimension_numbers<[1], [0], [0], [1], [0, 0, 1, 1], [], []>} : vector<2x32xbf16>, vector<32x96xbf16>, vector<2x96xf32> -> vector<2x96xf32>
    %50 = vector.broadcast %11 : vector<1x96xf32> to vector<2x96xf32>
    %51 = arith.addf %49, %50 : vector<2x96xf32>
    %52 = vector.extract_strided_slice %47 {offsets = [0, 0], sizes = [2, 32], strides = [1, 1]} : vector<2x96xf32> to vector<2x32xf32>
    %53 = vector.extract_strided_slice %51 {offsets = [0, 0], sizes = [2, 32], strides = [1, 1]} : vector<2x96xf32> to vector<2x32xf32>
    %54 = arith.addf %52, %53 : vector<2x32xf32>
    %55 = arith.negf %54 : vector<2x32xf32>
    %56 = math.exp %55 : vector<2x32xf32>
    %cst_18 = arith.constant 1.000000e+00 : f32
    %57 = vector.broadcast %cst_18 : f32 to vector<2x32xf32>
    %58 = arith.addf %57, %56 : vector<2x32xf32>
    %59 = arith.divf %57, %58 : vector<2x32xf32>
    %60 = vector.extract_strided_slice %47 {offsets = [0, 32], sizes = [2, 32], strides = [1, 1]} : vector<2x96xf32> to vector<2x32xf32>
    %61 = vector.extract_strided_slice %51 {offsets = [0, 32], sizes = [2, 32], strides = [1, 1]} : vector<2x96xf32> to vector<2x32xf32>
    %62 = arith.addf %60, %61 : vector<2x32xf32>
    %63 = arith.negf %62 : vector<2x32xf32>
    %64 = math.exp %63 : vector<2x32xf32>
    %cst_19 = arith.constant 1.000000e+00 : f32
    %65 = vector.broadcast %cst_19 : f32 to vector<2x32xf32>
    %66 = arith.addf %65, %64 : vector<2x32xf32>
    %67 = arith.divf %65, %66 : vector<2x32xf32>
    %68 = vector.extract_strided_slice %47 {offsets = [0, 64], sizes = [2, 32], strides = [1, 1]} : vector<2x96xf32> to vector<2x32xf32>
    %69 = vector.extract_strided_slice %51 {offsets = [0, 64], sizes = [2, 32], strides = [1, 1]} : vector<2x96xf32> to vector<2x32xf32>
    %70 = arith.mulf %59, %69 : vector<2x32xf32>
    %71 = arith.addf %68, %70 : vector<2x32xf32>
    %72 = math.tanh %71 : vector<2x32xf32>
    %cst_20 = arith.constant 1.000000e+00 : f32
    %73 = vector.broadcast %cst_20 : f32 to vector<2x32xf32>
    %74 = arith.subf %73, %67 : vector<2x32xf32>
    %75 = arith.mulf %74, %72 : vector<2x32xf32>
    %76 = arith.mulf %67, %43 : vector<2x32xf32>
    %77 = arith.addf %75, %76 : vector<2x32xf32>
    %c1 = arith.constant 1 : index
    %c0_21 = arith.constant 0 : index
    %c0_22 = arith.constant 0 : index
    %78 = vector.load %arg4[%c1, %c0_21, %c0_22] : memref<8x2x32xf32, #tpu.memory_space<vmem>>, vector<1x2x32xf32>
    %79 = vector.shape_cast %78 : vector<1x2x32xf32> to vector<2x32xf32>
    %80 = vector.shape_cast %77 : vector<2x32xf32> to vector<1x2x32xf32>
    tpu.vector_store %arg4[%c1, %c0_21, %c0_22], %80 {strides = array<i32>} : memref<8x2x32xf32, #tpu.memory_space<vmem>>, vector<1x2x32xf32>,
    %81 = vector.extract_strided_slice %9 {offsets = [4, 0], sizes = [2, 96], strides = [1, 1]} : vector<16x96xf32> to vector<2x96xf32>
    %82 = arith.truncf %77 : vector<2x32xf32> to vector<2x32xbf16>
    %cst_23 = arith.constant dense<0.000000e+00> : vector<2x96xf32>
    %83 = tpu.matmul %82, %10, %cst_23 {dimension_numbers = #tpu.dot_dimension_numbers<[1], [0], [0], [1], [0, 0, 1, 1], [], []>} : vector<2x32xbf16>, vector<32x96xbf16>, vector<2x96xf32> -> vector<2x96xf32>
    %84 = vector.broadcast %11 : vector<1x96xf32> to vector<2x96xf32>
    %85 = arith.addf %83, %84 : vector<2x96xf32>
    %86 = vector.extract_strided_slice %81 {offsets = [0, 0], sizes = [2, 32], strides = [1, 1]} : vector<2x96xf32> to vector<2x32xf32>
    %87 = vector.extract_strided_slice %85 {offsets = [0, 0], sizes = [2, 32], strides = [1, 1]} : vector<2x96xf32> to vector<2x32xf32>
    %88 = arith.addf %86, %87 : vector<2x32xf32>
    %89 = arith.negf %88 : vector<2x32xf32>
    %90 = math.exp %89 : vector<2x32xf32>
    %cst_24 = arith.constant 1.000000e+00 : f32
    %91 = vector.broadcast %cst_24 : f32 to vector<2x32xf32>
    %92 = arith.addf %91, %90 : vector<2x32xf32>
    %93 = arith.divf %91, %92 : vector<2x32xf32>
    %94 = vector.extract_strided_slice %81 {offsets = [0, 32], sizes = [2, 32], strides = [1, 1]} : vector<2x96xf32> to vector<2x32xf32>
    %95 = vector.extract_strided_slice %85 {offsets = [0, 32], sizes = [2, 32], strides = [1, 1]} : vector<2x96xf32> to vector<2x32xf32>
    %96 = arith.addf %94, %95 : vector<2x32xf32>
    %97 = arith.negf %96 : vector<2x32xf32>
    %98 = math.exp %97 : vector<2x32xf32>
    %cst_25 = arith.constant 1.000000e+00 : f32
    %99 = vector.broadcast %cst_25 : f32 to vector<2x32xf32>
    %100 = arith.addf %99, %98 : vector<2x32xf32>
    %101 = arith.divf %99, %100 : vector<2x32xf32>
    %102 = vector.extract_strided_slice %81 {offsets = [0, 64], sizes = [2, 32], strides = [1, 1]} : vector<2x96xf32> to vector<2x32xf32>
    %103 = vector.extract_strided_slice %85 {offsets = [0, 64], sizes = [2, 32], strides = [1, 1]} : vector<2x96xf32> to vector<2x32xf32>
    %104 = arith.mulf %93, %103 : vector<2x32xf32>
    %105 = arith.addf %102, %104 : vector<2x32xf32>
    %106 = math.tanh %105 : vector<2x32xf32>
    %cst_26 = arith.constant 1.000000e+00 : f32
    %107 = vector.broadcast %cst_26 : f32 to vector<2x32xf32>
    %108 = arith.subf %107, %101 : vector<2x32xf32>
    %109 = arith.mulf %108, %106 : vector<2x32xf32>
    %110 = arith.mulf %101, %77 : vector<2x32xf32>
    %111 = arith.addf %109, %110 : vector<2x32xf32>
    %c2 = arith.constant 2 : index
    %c0_27 = arith.constant 0 : index
    %c0_28 = arith.constant 0 : index
    %112 = vector.load %arg4[%c2, %c0_27, %c0_28] : memref<8x2x32xf32, #tpu.memory_space<vmem>>, vector<1x2x32xf32>
    %113 = vector.shape_cast %112 : vector<1x2x32xf32> to vector<2x32xf32>
    %114 = vector.shape_cast %111 : vector<2x32xf32> to vector<1x2x32xf32>
    tpu.vector_store %arg4[%c2, %c0_27, %c0_28], %114 {strides = array<i32>} : memref<8x2x32xf32, #tpu.memory_space<vmem>>, vector<1x2x32xf32>,
    %115 = vector.extract_strided_slice %9 {offsets = [6, 0], sizes = [2, 96], strides = [1, 1]} : vector<16x96xf32> to vector<2x96xf32>
    %116 = arith.truncf %111 : vector<2x32xf32> to vector<2x32xbf16>
    %cst_29 = arith.constant dense<0.000000e+00> : vector<2x96xf32>
    %117 = tpu.matmul %116, %10, %cst_29 {dimension_numbers = #tpu.dot_dimension_numbers<[1], [0], [0], [1], [0, 0, 1, 1], [], []>} : vector<2x32xbf16>, vector<32x96xbf16>, vector<2x96xf32> -> vector<2x96xf32>
    %118 = vector.broadcast %11 : vector<1x96xf32> to vector<2x96xf32>
    %119 = arith.addf %117, %118 : vector<2x96xf32>
    %120 = vector.extract_strided_slice %115 {offsets = [0, 0], sizes = [2, 32], strides = [1, 1]} : vector<2x96xf32> to vector<2x32xf32>
    %121 = vector.extract_strided_slice %119 {offsets = [0, 0], sizes = [2, 32], strides = [1, 1]} : vector<2x96xf32> to vector<2x32xf32>
    %122 = arith.addf %120, %121 : vector<2x32xf32>
    %123 = arith.negf %122 : vector<2x32xf32>
    %124 = math.exp %123 : vector<2x32xf32>
    %cst_30 = arith.constant 1.000000e+00 : f32
    %125 = vector.broadcast %cst_30 : f32 to vector<2x32xf32>
    %126 = arith.addf %125, %124 : vector<2x32xf32>
    %127 = arith.divf %125, %126 : vector<2x32xf32>
    %128 = vector.extract_strided_slice %115 {offsets = [0, 32], sizes = [2, 32], strides = [1, 1]} : vector<2x96xf32> to vector<2x32xf32>
    %129 = vector.extract_strided_slice %119 {offsets = [0, 32], sizes = [2, 32], strides = [1, 1]} : vector<2x96xf32> to vector<2x32xf32>
    %130 = arith.addf %128, %129 : vector<2x32xf32>
    %131 = arith.negf %130 : vector<2x32xf32>
    %132 = math.exp %131 : vector<2x32xf32>
    %cst_31 = arith.constant 1.000000e+00 : f32
    %133 = vector.broadcast %cst_31 : f32 to vector<2x32xf32>
    %134 = arith.addf %133, %132 : vector<2x32xf32>
    %135 = arith.divf %133, %134 : vector<2x32xf32>
    %136 = vector.extract_strided_slice %115 {offsets = [0, 64], sizes = [2, 32], strides = [1, 1]} : vector<2x96xf32> to vector<2x32xf32>
    %137 = vector.extract_strided_slice %119 {offsets = [0, 64], sizes = [2, 32], strides = [1, 1]} : vector<2x96xf32> to vector<2x32xf32>
    %138 = arith.mulf %127, %137 : vector<2x32xf32>
    %139 = arith.addf %136, %138 : vector<2x32xf32>
    %140 = math.tanh %139 : vector<2x32xf32>
    %cst_32 = arith.constant 1.000000e+00 : f32
    %141 = vector.broadcast %cst_32 : f32 to vector<2x32xf32>
    %142 = arith.subf %141, %135 : vector<2x32xf32>
    %143 = arith.mulf %142, %140 : vector<2x32xf32>
    %144 = arith.mulf %135, %111 : vector<2x32xf32>
    %145 = arith.addf %143, %144 : vector<2x32xf32>
    %c3 = arith.constant 3 : index
    %c0_33 = arith.constant 0 : index
    %c0_34 = arith.constant 0 : index
    %146 = vector.load %arg4[%c3, %c0_33, %c0_34] : memref<8x2x32xf32, #tpu.memory_space<vmem>>, vector<1x2x32xf32>
    %147 = vector.shape_cast %146 : vector<1x2x32xf32> to vector<2x32xf32>
    %148 = vector.shape_cast %145 : vector<2x32xf32> to vector<1x2x32xf32>
    tpu.vector_store %arg4[%c3, %c0_33, %c0_34], %148 {strides = array<i32>} : memref<8x2x32xf32, #tpu.memory_space<vmem>>, vector<1x2x32xf32>,
    %149 = vector.extract_strided_slice %9 {offsets = [8, 0], sizes = [2, 96], strides = [1, 1]} : vector<16x96xf32> to vector<2x96xf32>
    %150 = arith.truncf %145 : vector<2x32xf32> to vector<2x32xbf16>
    %cst_35 = arith.constant dense<0.000000e+00> : vector<2x96xf32>
    %151 = tpu.matmul %150, %10, %cst_35 {dimension_numbers = #tpu.dot_dimension_numbers<[1], [0], [0], [1], [0, 0, 1, 1], [], []>} : vector<2x32xbf16>, vector<32x96xbf16>, vector<2x96xf32> -> vector<2x96xf32>
    %152 = vector.broadcast %11 : vector<1x96xf32> to vector<2x96xf32>
    %153 = arith.addf %151, %152 : vector<2x96xf32>
    %154 = vector.extract_strided_slice %149 {offsets = [0, 0], sizes = [2, 32], strides = [1, 1]} : vector<2x96xf32> to vector<2x32xf32>
    %155 = vector.extract_strided_slice %153 {offsets = [0, 0], sizes = [2, 32], strides = [1, 1]} : vector<2x96xf32> to vector<2x32xf32>
    %156 = arith.addf %154, %155 : vector<2x32xf32>
    %157 = arith.negf %156 : vector<2x32xf32>
    %158 = math.exp %157 : vector<2x32xf32>
    %cst_36 = arith.constant 1.000000e+00 : f32
    %159 = vector.broadcast %cst_36 : f32 to vector<2x32xf32>
    %160 = arith.addf %159, %158 : vector<2x32xf32>
    %161 = arith.divf %159, %160 : vector<2x32xf32>
    %162 = vector.extract_strided_slice %149 {offsets = [0, 32], sizes = [2, 32], strides = [1, 1]} : vector<2x96xf32> to vector<2x32xf32>
    %163 = vector.extract_strided_slice %153 {offsets = [0, 32], sizes = [2, 32], strides = [1, 1]} : vector<2x96xf32> to vector<2x32xf32>
    %164 = arith.addf %162, %163 : vector<2x32xf32>
    %165 = arith.negf %164 : vector<2x32xf32>
    %166 = math.exp %165 : vector<2x32xf32>
    %cst_37 = arith.constant 1.000000e+00 : f32
    %167 = vector.broadcast %cst_37 : f32 to vector<2x32xf32>
    %168 = arith.addf %167, %166 : vector<2x32xf32>
    %169 = arith.divf %167, %168 : vector<2x32xf32>
    %170 = vector.extract_strided_slice %149 {offsets = [0, 64], sizes = [2, 32], strides = [1, 1]} : vector<2x96xf32> to vector<2x32xf32>
    %171 = vector.extract_strided_slice %153 {offsets = [0, 64], sizes = [2, 32], strides = [1, 1]} : vector<2x96xf32> to vector<2x32xf32>
    %172 = arith.mulf %161, %171 : vector<2x32xf32>
    %173 = arith.addf %170, %172 : vector<2x32xf32>
    %174 = math.tanh %173 : vector<2x32xf32>
    %cst_38 = arith.constant 1.000000e+00 : f32
    %175 = vector.broadcast %cst_38 : f32 to vector<2x32xf32>
    %176 = arith.subf %175, %169 : vector<2x32xf32>
    %177 = arith.mulf %176, %174 : vector<2x32xf32>
    %178 = arith.mulf %169, %145 : vector<2x32xf32>
    %179 = arith.addf %177, %178 : vector<2x32xf32>
    %c4 = arith.constant 4 : index
    %c0_39 = arith.constant 0 : index
    %c0_40 = arith.constant 0 : index
    %180 = vector.load %arg4[%c4, %c0_39, %c0_40] : memref<8x2x32xf32, #tpu.memory_space<vmem>>, vector<1x2x32xf32>
    %181 = vector.shape_cast %180 : vector<1x2x32xf32> to vector<2x32xf32>
    %182 = vector.shape_cast %179 : vector<2x32xf32> to vector<1x2x32xf32>
    tpu.vector_store %arg4[%c4, %c0_39, %c0_40], %182 {strides = array<i32>} : memref<8x2x32xf32, #tpu.memory_space<vmem>>, vector<1x2x32xf32>,
    %183 = vector.extract_strided_slice %9 {offsets = [10, 0], sizes = [2, 96], strides = [1, 1]} : vector<16x96xf32> to vector<2x96xf32>
    %184 = arith.truncf %179 : vector<2x32xf32> to vector<2x32xbf16>
    %cst_41 = arith.constant dense<0.000000e+00> : vector<2x96xf32>
    %185 = tpu.matmul %184, %10, %cst_41 {dimension_numbers = #tpu.dot_dimension_numbers<[1], [0], [0], [1], [0, 0, 1, 1], [], []>} : vector<2x32xbf16>, vector<32x96xbf16>, vector<2x96xf32> -> vector<2x96xf32>
    %186 = vector.broadcast %11 : vector<1x96xf32> to vector<2x96xf32>
    %187 = arith.addf %185, %186 : vector<2x96xf32>
    %188 = vector.extract_strided_slice %183 {offsets = [0, 0], sizes = [2, 32], strides = [1, 1]} : vector<2x96xf32> to vector<2x32xf32>
    %189 = vector.extract_strided_slice %187 {offsets = [0, 0], sizes = [2, 32], strides = [1, 1]} : vector<2x96xf32> to vector<2x32xf32>
    %190 = arith.addf %188, %189 : vector<2x32xf32>
    %191 = arith.negf %190 : vector<2x32xf32>
    %192 = math.exp %191 : vector<2x32xf32>
    %cst_42 = arith.constant 1.000000e+00 : f32
    %193 = vector.broadcast %cst_42 : f32 to vector<2x32xf32>
    %194 = arith.addf %193, %192 : vector<2x32xf32>
    %195 = arith.divf %193, %194 : vector<2x32xf32>
    %196 = vector.extract_strided_slice %183 {offsets = [0, 32], sizes = [2, 32], strides = [1, 1]} : vector<2x96xf32> to vector<2x32xf32>
    %197 = vector.extract_strided_slice %187 {offsets = [0, 32], sizes = [2, 32], strides = [1, 1]} : vector<2x96xf32> to vector<2x32xf32>
    %198 = arith.addf %196, %197 : vector<2x32xf32>
    %199 = arith.negf %198 : vector<2x32xf32>
    %200 = math.exp %199 : vector<2x32xf32>
    %cst_43 = arith.constant 1.000000e+00 : f32
    %201 = vector.broadcast %cst_43 : f32 to vector<2x32xf32>
    %202 = arith.addf %201, %200 : vector<2x32xf32>
    %203 = arith.divf %201, %202 : vector<2x32xf32>
    %204 = vector.extract_strided_slice %183 {offsets = [0, 64], sizes = [2, 32], strides = [1, 1]} : vector<2x96xf32> to vector<2x32xf32>
    %205 = vector.extract_strided_slice %187 {offsets = [0, 64], sizes = [2, 32], strides = [1, 1]} : vector<2x96xf32> to vector<2x32xf32>
    %206 = arith.mulf %195, %205 : vector<2x32xf32>
    %207 = arith.addf %204, %206 : vector<2x32xf32>
    %208 = math.tanh %207 : vector<2x32xf32>
    %cst_44 = arith.constant 1.000000e+00 : f32
    %209 = vector.broadcast %cst_44 : f32 to vector<2x32xf32>
    %210 = arith.subf %209, %203 : vector<2x32xf32>
    %211 = arith.mulf %210, %208 : vector<2x32xf32>
    %212 = arith.mulf %203, %179 : vector<2x32xf32>
    %213 = arith.addf %211, %212 : vector<2x32xf32>
    %c5 = arith.constant 5 : index
    %c0_45 = arith.constant 0 : index
    %c0_46 = arith.constant 0 : index
    %214 = vector.load %arg4[%c5, %c0_45, %c0_46] : memref<8x2x32xf32, #tpu.memory_space<vmem>>, vector<1x2x32xf32>
    %215 = vector.shape_cast %214 : vector<1x2x32xf32> to vector<2x32xf32>
    %216 = vector.shape_cast %213 : vector<2x32xf32> to vector<1x2x32xf32>
    tpu.vector_store %arg4[%c5, %c0_45, %c0_46], %216 {strides = array<i32>} : memref<8x2x32xf32, #tpu.memory_space<vmem>>, vector<1x2x32xf32>,
    %217 = vector.extract_strided_slice %9 {offsets = [12, 0], sizes = [2, 96], strides = [1, 1]} : vector<16x96xf32> to vector<2x96xf32>
    %218 = arith.truncf %213 : vector<2x32xf32> to vector<2x32xbf16>
    %cst_47 = arith.constant dense<0.000000e+00> : vector<2x96xf32>
    %219 = tpu.matmul %218, %10, %cst_47 {dimension_numbers = #tpu.dot_dimension_numbers<[1], [0], [0], [1], [0, 0, 1, 1], [], []>} : vector<2x32xbf16>, vector<32x96xbf16>, vector<2x96xf32> -> vector<2x96xf32>
    %220 = vector.broadcast %11 : vector<1x96xf32> to vector<2x96xf32>
    %221 = arith.addf %219, %220 : vector<2x96xf32>
    %222 = vector.extract_strided_slice %217 {offsets = [0, 0], sizes = [2, 32], strides = [1, 1]} : vector<2x96xf32> to vector<2x32xf32>
    %223 = vector.extract_strided_slice %221 {offsets = [0, 0], sizes = [2, 32], strides = [1, 1]} : vector<2x96xf32> to vector<2x32xf32>
    %224 = arith.addf %222, %223 : vector<2x32xf32>
    %225 = arith.negf %224 : vector<2x32xf32>
    %226 = math.exp %225 : vector<2x32xf32>
    %cst_48 = arith.constant 1.000000e+00 : f32
    %227 = vector.broadcast %cst_48 : f32 to vector<2x32xf32>
    %228 = arith.addf %227, %226 : vector<2x32xf32>
    %229 = arith.divf %227, %228 : vector<2x32xf32>
    %230 = vector.extract_strided_slice %217 {offsets = [0, 32], sizes = [2, 32], strides = [1, 1]} : vector<2x96xf32> to vector<2x32xf32>
    %231 = vector.extract_strided_slice %221 {offsets = [0, 32], sizes = [2, 32], strides = [1, 1]} : vector<2x96xf32> to vector<2x32xf32>
    %232 = arith.addf %230, %231 : vector<2x32xf32>
    %233 = arith.negf %232 : vector<2x32xf32>
    %234 = math.exp %233 : vector<2x32xf32>
    %cst_49 = arith.constant 1.000000e+00 : f32
    %235 = vector.broadcast %cst_49 : f32 to vector<2x32xf32>
    %236 = arith.addf %235, %234 : vector<2x32xf32>
    %237 = arith.divf %235, %236 : vector<2x32xf32>
    %238 = vector.extract_strided_slice %217 {offsets = [0, 64], sizes = [2, 32], strides = [1, 1]} : vector<2x96xf32> to vector<2x32xf32>
    %239 = vector.extract_strided_slice %221 {offsets = [0, 64], sizes = [2, 32], strides = [1, 1]} : vector<2x96xf32> to vector<2x32xf32>
    %240 = arith.mulf %229, %239 : vector<2x32xf32>
    %241 = arith.addf %238, %240 : vector<2x32xf32>
    %242 = math.tanh %241 : vector<2x32xf32>
    %cst_50 = arith.constant 1.000000e+00 : f32
    %243 = vector.broadcast %cst_50 : f32 to vector<2x32xf32>
    %244 = arith.subf %243, %237 : vector<2x32xf32>
    %245 = arith.mulf %244, %242 : vector<2x32xf32>
    %246 = arith.mulf %237, %213 : vector<2x32xf32>
    %247 = arith.addf %245, %246 : vector<2x32xf32>
    %c6 = arith.constant 6 : index
    %c0_51 = arith.constant 0 : index
    %c0_52 = arith.constant 0 : index
    %248 = vector.load %arg4[%c6, %c0_51, %c0_52] : memref<8x2x32xf32, #tpu.memory_space<vmem>>, vector<1x2x32xf32>
    %249 = vector.shape_cast %248 : vector<1x2x32xf32> to vector<2x32xf32>
    %250 = vector.shape_cast %247 : vector<2x32xf32> to vector<1x2x32xf32>
    tpu.vector_store %arg4[%c6, %c0_51, %c0_52], %250 {strides = array<i32>} : memref<8x2x32xf32, #tpu.memory_space<vmem>>, vector<1x2x32xf32>,
    %251 = vector.extract_strided_slice %9 {offsets = [14, 0], sizes = [2, 96], strides = [1, 1]} : vector<16x96xf32> to vector<2x96xf32>
    %252 = arith.truncf %247 : vector<2x32xf32> to vector<2x32xbf16>
    %cst_53 = arith.constant dense<0.000000e+00> : vector<2x96xf32>
    %253 = tpu.matmul %252, %10, %cst_53 {dimension_numbers = #tpu.dot_dimension_numbers<[1], [0], [0], [1], [0, 0, 1, 1], [], []>} : vector<2x32xbf16>, vector<32x96xbf16>, vector<2x96xf32> -> vector<2x96xf32>
    %254 = vector.broadcast %11 : vector<1x96xf32> to vector<2x96xf32>
    %255 = arith.addf %253, %254 : vector<2x96xf32>
    %256 = vector.extract_strided_slice %251 {offsets = [0, 0], sizes = [2, 32], strides = [1, 1]} : vector<2x96xf32> to vector<2x32xf32>
    %257 = vector.extract_strided_slice %255 {offsets = [0, 0], sizes = [2, 32], strides = [1, 1]} : vector<2x96xf32> to vector<2x32xf32>
    %258 = arith.addf %256, %257 : vector<2x32xf32>
    %259 = arith.negf %258 : vector<2x32xf32>
    %260 = math.exp %259 : vector<2x32xf32>
    %cst_54 = arith.constant 1.000000e+00 : f32
    %261 = vector.broadcast %cst_54 : f32 to vector<2x32xf32>
    %262 = arith.addf %261, %260 : vector<2x32xf32>
    %263 = arith.divf %261, %262 : vector<2x32xf32>
    %264 = vector.extract_strided_slice %251 {offsets = [0, 32], sizes = [2, 32], strides = [1, 1]} : vector<2x96xf32> to vector<2x32xf32>
    %265 = vector.extract_strided_slice %255 {offsets = [0, 32], sizes = [2, 32], strides = [1, 1]} : vector<2x96xf32> to vector<2x32xf32>
    %266 = arith.addf %264, %265 : vector<2x32xf32>
    %267 = arith.negf %266 : vector<2x32xf32>
    %268 = math.exp %267 : vector<2x32xf32>
    %cst_55 = arith.constant 1.000000e+00 : f32
    %269 = vector.broadcast %cst_55 : f32 to vector<2x32xf32>
    %270 = arith.addf %269, %268 : vector<2x32xf32>
    %271 = arith.divf %269, %270 : vector<2x32xf32>
    %272 = vector.extract_strided_slice %251 {offsets = [0, 64], sizes = [2, 32], strides = [1, 1]} : vector<2x96xf32> to vector<2x32xf32>
    %273 = vector.extract_strided_slice %255 {offsets = [0, 64], sizes = [2, 32], strides = [1, 1]} : vector<2x96xf32> to vector<2x32xf32>
    %274 = arith.mulf %263, %273 : vector<2x32xf32>
    %275 = arith.addf %272, %274 : vector<2x32xf32>
    %276 = math.tanh %275 : vector<2x32xf32>
    %cst_56 = arith.constant 1.000000e+00 : f32
    %277 = vector.broadcast %cst_56 : f32 to vector<2x32xf32>
    %278 = arith.subf %277, %271 : vector<2x32xf32>
    %279 = arith.mulf %278, %276 : vector<2x32xf32>
    %280 = arith.mulf %271, %247 : vector<2x32xf32>
    %281 = arith.addf %279, %280 : vector<2x32xf32>
    %c7 = arith.constant 7 : index
    %c0_57 = arith.constant 0 : index
    %c0_58 = arith.constant 0 : index
    %282 = vector.load %arg4[%c7, %c0_57, %c0_58] : memref<8x2x32xf32, #tpu.memory_space<vmem>>, vector<1x2x32xf32>
    %283 = vector.shape_cast %282 : vector<1x2x32xf32> to vector<2x32xf32>
    %284 = vector.shape_cast %281 : vector<2x32xf32> to vector<1x2x32xf32>
    tpu.vector_store %arg4[%c7, %c0_57, %c0_58], %284 {strides = array<i32>} : memref<8x2x32xf32, #tpu.memory_space<vmem>>, vector<1x2x32xf32>,
    return
  }
}

</mosaic_0001>

<bundles_post_ra>
// kernel: encoder_forward.1
= control target key start
LH: loop header
LB: loop body
LE: loop exit
PB: predicated region body
PF: predicated region fallthrough
CT: control target
= control target key end

     0   :  { %v995_v0 = vmov 0   ;;  %v996_v3 = vmov 0.0   ;;  %vm997_vm0 = vmmov 0   ;;  %v18_v10 = vlaneseq  ;;  %s998_s30 = smov 64   ;;  %s1248_s0 = inlined_call_operand.vmem [shape: s32[16,1], index: 0, kind: input, shape index: {}]   ;;  %s1249_s2 = inlined_call_operand.vmem [shape: bf16[32,96], index: 2, kind: input, shape index: {}]   ;;  %s1250_s1 = inlined_call_operand.vmem [shape: bf16[64,96], index: 1, kind: input, shape index: {}]   ;;  %s1251_s3 = inlined_call_operand.vmem [shape: f32[1,96], index: 3, kind: input, shape index: {}]   ;;  %s1252_s4 = inlined_call_operand.vmem [shape: f32[8,2,32], index: 4, kind: output, shape index: {}]  }
   0x1   :  { %940 = vset.pattern.permute.xlu0 %v995_v0  ;;  %v20_v1 = vld [vmem:[%s1248_s0] sm:$0xff]  ;;  %v21_v2 = vld [vmem:[%s1248_s0 + $0x8] sm:$0xff]  ;;  %871 = vmatprep.subr.bf16.mxu1 %v996_v3  ;;  %v943_v6 = vld [vmem:[%s1250_s1 + $0x18] sm:$0xff]   ;;  %vm65_vm3 = vcmask 523264   ;;  %vm133_vm4 = vcmask 261120   ;;  %vm207_vm5 = vcmask 254976  }
   0x2   :  { %23 = vperm.xlu0 %940, %v20_v1   ;;  %v1035_v4 = vld [vmem:[%s1249_s2 + $0x8] sm:$0xff]   ;;  %875 = vmatprep.mubr.msk.bf16.mxu1 %vm997_vm0, %v996_v3  ;;  %v1042_v5 = vld [vmem:[%s1249_s2] sm:$0xff]   ;;  %v944_v7 = vld [vmem:[%s1250_s1 + $0x10] sm:$0xff]   ;;  %v19_v11 = vand.u32 127, %v18_v10  ;;  %vm376_vm6 = vcmask 259076   ;;  %vm291_vm7 = vcmask 257026  }
   0x3   :  { %859 = vmatprep.subr.bf16.mxu0 %v996_v3  ;;  %867 = vmatprep.mubr.msk.bf16.mxu0 %vm997_vm0, %v996_v3  ;;  %v945_v8 = vld [vmem:[%s1250_s1 + $0x8] sm:$0xff]   ;;  %v946_v9 = vld [vmem:[%s1250_s1] sm:$0xff]   ;;  %vm461_vm8 = vcmask 261126  }
   0x4   :  { %872 = vmatpush3.bf16.msra.mxu1 %v1035_v4  ;;  %860 = vmatpush3.bf16.msra.mxu0 %v943_v6  ;;  %v1084_v17 = vld [vmem:[%s1251_s3] ss:$0 sm:$0xff]  ;;  %s999_s3 = smov 96  }
   0x5   :  { %873 = vmatprep.subr.bf16.mxu1 %v996_v3  ;;  %861 = vmatprep.subr.bf16.mxu0 %v996_v3 }
   0x6   :  { %26 = vperm.xlu0 %940, %v21_v2  }
   0x8   :  { %874 = vmatpush3.bf16.msra.mxu1 %v1042_v5  ;;  %862 = vmatpush3.bf16.msra.mxu0 %v944_v7 }
   0x9   :  { %879 = vmatprep.subr.bf16.mxu1 %v996_v3  ;;  %863 = vmatprep.subr.bf16.mxu0 %v996_v3 }
   0xb   :  { %876 = vmatmul.mubr.bf16.vlgmr.msra.gmra.mxu1 %v995_v0 }
   0xc   :  { %880 = vmatpush3.bf16.msra.mxu1 %v1035_v4  ;;  %883 = vmatprep.mubr.msk.bf16.mxu1 %vm997_vm0, %v996_v3 }
   0xd   :  { %881 = vmatprep.subr.bf16.mxu1 %v996_v3  ;;  %864 = vmatpush3.bf16.msra.mxu0 %v945_v8 }
   0xe   :  { %865 = vmatprep.subr.bf16.mxu0 %v996_v3 }
  0x10   :  { %882 = vmatpush3.bf16.msra.mxu1 %v1042_v5 }
  0x11   :  { %895 = vmatprep.subr.bf16.mxu1 %v996_v3  ;;  %866 = vmatpush3.bf16.msra.mxu0 %v946_v9 }
  0x12   :  { %887 = vmatprep.subr.bf16.mxu0 %v996_v3 }
  0x7d   :  { %v24_v12 = vpop.permute.xlu0 %23 }
  0x7e   :  { %vm28_vm1 = vcmp.eq.s32.totalorder %v19_v11, %v24_v12 }
  0x7f   :  { %v30_v14 = vsel %vm28_vm1, 1.0, %v996_v3 }
  0x81   :  { %v27_v13 = vpop.permute.xlu0 %26 }
  0x82   :  { %vm29_vm2 = vcmp.eq.s32.totalorder %v19_v11, %v27_v13 }
  0x83   :  { %v31_v15 = vsel %vm29_vm2, 1.0, %v996_v3 }
  0x84   :  { %v32_v16 = vpack.c.bf16 %v31_v15, %v30_v14 }
  0x86   :  { %868 = vmatmul.mubr.msk.bf16.vlgmr.msra.gmra.mxu0 %vm65_vm3, %v32_v16 }
  0x87   :  { %888 = vmatpush3.bf16.msra.mxu0 %v1035_v4  ;;  %891 = vmatprep.mubr.msk.bf16.mxu0 %vm997_vm0, %v996_v3 }
  0x88   :  { %889 = vmatprep.subr.bf16.mxu0 %v996_v3 }
  0x8b   :  { %890 = vmatpush3.bf16.msra.mxu0 %v1042_v5 }
  0x8c   :  { %903 = vmatprep.subr.bf16.mxu0 %v996_v3 }
  0xcb   :  { %v171_v18 = vpop.f32.mrf.mxu1 }
  0xcc   :  { %v172_v19 = vadd.f32 %v1084_v17, %v171_v18 }
  0xcd   :  { %v877_v20 = vpop.f32.mrf.mxu1 }
  0xce   :  { %185 = vrot.lane.b32.xlu1 %v172_v19, %s998_s30 }
  0xcf   :  { %v174_v21 = vpop.f32.mrf.mxu1 }
  0xd1   :  { %v878_v22 = vpop.f32.mrf.mxu1 }
 0x140   :  { %v186_v31 = vpop.permute.xlu1 %185 }
 0x146   :  { %v1088_v23 = vpop.f32.mrf.mxu0 }
 0x147   :  { %v177_v24 = vadd.f32 %v172_v19, %v1088_v23 }
 0x148   :  { %v869_v25 = vpop.f32.mrf.mxu0 }
 0x149   :  { %v808_v26 = vmul.f32 -1.442695, %v177_v24 }
 0x14a   :  { %v1091_v27 = vpop.f32.mrf.mxu0 }
 0x14b   :  { %947 = vpow2.f32 %v808_v26 }
 0x14c   :  { %v870_v28 = vpop.f32.mrf.mxu0 }
 0x158   :  { %v948_v29 = vpop.eup %947 }
 0x159   :  { %v181_v30 = vadd.f32 1.0, %v948_v29 }
 0x15b   :  { %949 = vrcp.f32 %v181_v30 }
 0x168   :  { %v950_v32 = vpop.eup %949 }
 0x169   :  { %v188_v33 = vmul.f32 %v950_v32, %v186_v31  ;;  %v195_v37 = vsub.f32 1.0, %v950_v32  ;;  %v201_v39 = vmul.f32 0.0, %v950_v32 }
 0x16b   :  { %190 = vrot.lane.b32.xlu1 %v188_v33, %s998_s30 }
 0x1dd   :  { %v191_v34 = vpop.permute.xlu1 %190 }
 0x1de   :  { %v193_v35 = vadd.f32 %v191_v34, %v1088_v23 }
 0x1e0   :  { %951 = vtanh.f32 %v193_v35 }
 0x1ed   :  { %v952_v36 = vpop.eup %951 }
 0x1ee   :  { %197 = vrot.lane.b32.xlu0 %v952_v36, %s999_s3 }
 0x260   :  { %v198_v38 = vpop.permute.xlu0 %197 }
 0x261   :  { %v200_v40 = vmul.f32 %v198_v38, %v195_v37 }
 0x263   :  { %v1096_v41 = vadd.f32 %v201_v39, %v200_v40 }
 0x265   :  { %v209_v42 = vpack.c.bf16 %v1096_v41, %v1096_v41  ;;  %v282_v61 = vrot.slane %v1096_v41, 6 }
 0x267   :  { %211 = vrot.lane.b32.xlu1 %v209_v42, %s999_s3 }
 0x2d9   :  { %v212_v43 = vpop.permute.xlu1 %211 }
 0x2da   :  { %884 = vmatmul.mubr.msk.bf16.vlgmr.msra.gmra.mxu1 %vm133_vm4, %v212_v43 }
 0x2db   :  { %896 = vmatpush3.bf16.msra.mxu1 %v1035_v4  ;;  %899 = vmatprep.mubr.msk.bf16.mxu1 %vm997_vm0, %v996_v3 }
 0x2dc   :  { %897 = vmatprep.subr.bf16.mxu1 %v996_v3 }
 0x2df   :  { %898 = vmatpush3.bf16.msra.mxu1 %v1042_v5 }
 0x2e0   :  { %911 = vmatprep.subr.bf16.mxu1 %v996_v3 }
 0x39a   :  { %v250_v44 = vpop.f32.mrf.mxu1 }
 0x39b   :  { %v251_v45 = vadd.f32 %v1084_v17, %v250_v44 }
 0x39c   :  { %v885_v46 = vpop.f32.mrf.mxu1 }
 0x39d   :  { %v257_v47 = vrot.slane %v251_v45, 6 }
 0x39e   :  { %v253_v48 = vpop.f32.mrf.mxu1 }
 0x39f   :  { %266 = vrot.lane.b32.xlu0 %v257_v47, %s998_s30  ;;  %v259_v50 = vadd.f32 %v257_v47, %v1088_v23 }
 0x3a0   :  { %v886_v49 = vpop.f32.mrf.mxu1 }
 0x3a1   :  { %v810_v51 = vmul.f32 -1.442695, %v259_v50 }
 0x3a3   :  { %953 = vpow2.f32 %v810_v51 }
 0x3b0   :  { %v954_v52 = vpop.eup %953 }
 0x3b1   :  { %v263_v53 = vadd.f32 1.0, %v954_v52 }
 0x3b3   :  { %955 = vrcp.f32 %v263_v53 }
 0x3c0   :  { %v956_v54 = vpop.eup %955 }
 0x3c1   :  { %v276_v60 = vsub.f32 1.0, %v956_v54  ;;  %v284_v63 = vmul.f32 %v956_v54, %v282_v61 }
 0x411   :  { %v267_v55 = vpop.permute.xlu0 %266 }
 0x412   :  { %v269_v56 = vmul.f32 %v956_v54, %v267_v55 }
 0x414   :  { %271 = vrot.lane.b32.xlu1 %v269_v56, %s998_s30 }
 0x486   :  { %v272_v57 = vpop.permute.xlu1 %271 }
 0x487   :  { %v274_v58 = vadd.f32 %v272_v57, %v1088_v23 }
 0x489   :  { %957 = vtanh.f32 %v274_v58 }
 0x496   :  { %v958_v59 = vpop.eup %957 }
 0x497   :  { %278 = vrot.lane.b32.xlu0 %v958_v59, %s999_s3 }
 0x509   :  { %v279_v62 = vpop.permute.xlu0 %278 }
 0x50a   :  { %v281_v0 = vmul.f32 %v279_v62, %v276_v60 }
 0x50c   :  { %v1115_v1 = vadd.f32 %v284_v63, %v281_v0 }
 0x50e   :  { %v293_v2 = vpack.c.bf16 %v1115_v1, %v1115_v1  ;;  %v367_v28 = vrot.slane %v1115_v1, 6 }
 0x510   :  { %v295_v6 = vrot.slane %v293_v2, 1 }
 0x512   :  { %296 = vrot.lane.b32.xlu1 %v295_v6, %s999_s3 }
 0x584   :  { %v297_v7 = vpop.permute.xlu1 %296 }
 0x585   :  { %892 = vmatmul.mubr.msk.bf16.vlgmr.msra.gmra.mxu0 %vm133_vm4, %v297_v7 }
 0x586   :  { %904 = vmatpush3.bf16.msra.mxu0 %v1035_v4  ;;  %907 = vmatprep.mubr.msk.bf16.mxu0 %vm997_vm0, %v996_v3 }
 0x587   :  { %905 = vmatprep.subr.bf16.mxu0 %v996_v3 }
 0x58a   :  { %906 = vmatpush3.bf16.msra.mxu0 %v1042_v5 }
 0x58b   :  { %919 = vmatprep.subr.bf16.mxu0 %v996_v3 }
 0x645   :  { %v335_v8 = vpop.f32.mrf.mxu0 }
 0x646   :  { %v336_v9 = vadd.f32 %v1084_v17, %v335_v8 }
 0x647   :  { %v893_v10 = vpop.f32.mrf.mxu0 }
 0x648   :  { %v342_v11 = vrot.slane %v336_v9, 4 }
 0x649   :  { %v338_v12 = vpop.f32.mrf.mxu0 }
 0x64a   :  { %351 = vrot.lane.b32.xlu0 %v342_v11, %s998_s30  ;;  %v344_v14 = vadd.f32 %v342_v11, %v1088_v23 }
 0x64b   :  { %v894_v13 = vpop.f32.mrf.mxu0 }
 0x64c   :  { %v813_v15 = vmul.f32 -1.442695, %v344_v14 }
 0x64e   :  { %959 = vpow2.f32 %v813_v15 }
 0x65b   :  { %v960_v16 = vpop.eup %959 }
 0x65c   :  { %v348_v18 = vadd.f32 1.0, %v960_v16 }
 0x65e   :  { %961 = vrcp.f32 %v348_v18 }
 0x66b   :  { %v962_v19 = vpop.eup %961 }
 0x66c   :  { %v361_v26 = vsub.f32 1.0, %v962_v19  ;;  %v369_v30 = vmul.f32 %v962_v19, %v367_v28 }
 0x6bc   :  { %v352_v20 = vpop.permute.xlu0 %351 }
 0x6bd   :  { %v354_v21 = vmul.f32 %v962_v19, %v352_v20 }
 0x6bf   :  { %356 = vrot.lane.b32.xlu1 %v354_v21, %s998_s30 }
 0x731   :  { %v357_v22 = vpop.permute.xlu1 %356 }
 0x732   :  { %v359_v24 = vadd.f32 %v357_v22, %v1088_v23 }
 0x734   :  { %963 = vtanh.f32 %v359_v24 }
 0x741   :  { %v964_v25 = vpop.eup %963 }
 0x742   :  { %363 = vrot.lane.b32.xlu0 %v964_v25, %s999_s3 }
 0x7b4   :  { %v364_v29 = vpop.permute.xlu0 %363 }
 0x7b5   :  { %v366_v31 = vmul.f32 %v364_v29, %v361_v26 }
 0x7b7   :  { %v1134_v32 = vadd.f32 %v369_v30, %v366_v31 }
 0x7b9   :  { %v378_v33 = vpack.c.bf16 %v1134_v32, %v1134_v32  ;;  %v452_v54 = vrot.slane %v1134_v32, 6 }
 0x7bb   :  { %v380_v34 = vrot.slane %v378_v33, 2 }
 0x7bd   :  { %381 = vrot.lane.b32.xlu1 %v380_v34, %s999_s3 }
 0x82f   :  { %v382_v35 = vpop.permute.xlu1 %381 }
 0x830   :  { %900 = vmatmul.mubr.msk.bf16.vlgmr.msra.gmra.mxu1 %vm133_vm4, %v382_v35 }
 0x831   :  { %912 = vmatpush3.bf16.msra.mxu1 %v1035_v4  ;;  %915 = vmatprep.mubr.msk.bf16.mxu1 %vm997_vm0, %v996_v3 }
 0x832   :  { %913 = vmatprep.subr.bf16.mxu1 %v996_v3 }
 0x835   :  { %914 = vmatpush3.bf16.msra.mxu1 %v1042_v5 }
 0x836   :  { %927 = vmatprep.subr.bf16.mxu1 %v996_v3 }
 0x8f0   :  { %v420_v36 = vpop.f32.mrf.mxu1 }
 0x8f1   :  { %v421_v37 = vadd.f32 %v1084_v17, %v420_v36 }
 0x8f2   :  { %v901_v38 = vpop.f32.mrf.mxu1 }
 0x8f3   :  { %v427_v39 = vrot.slane %v421_v37, 2 }
 0x8f4   :  { %v423_v40 = vpop.f32.mrf.mxu1 }
 0x8f5   :  { %436 = vrot.lane.b32.xlu0 %v427_v39, %s998_s30  ;;  %v429_v43 = vadd.f32 %v427_v39, %v1088_v23 }
 0x8f6   :  { %v902_v42 = vpop.f32.mrf.mxu1 }
 0x8f7   :  { %v816_v44 = vmul.f32 -1.442695, %v429_v43 }
 0x8f9   :  { %965 = vpow2.f32 %v816_v44 }
 0x906   :  { %v966_v45 = vpop.eup %965 }
 0x907   :  { %v433_v46 = vadd.f32 1.0, %v966_v45 }
 0x909   :  { %967 = vrcp.f32 %v433_v46 }
 0x916   :  { %v968_v47 = vpop.eup %967 }
 0x917   :  { %v446_v53 = vsub.f32 1.0, %v968_v47  ;;  %v454_v56 = vmul.f32 %v968_v47, %v452_v54 }
 0x967   :  { %v437_v48 = vpop.permute.xlu0 %436 }
 0x968   :  { %v439_v49 = vmul.f32 %v968_v47, %v437_v48 }
 0x96a   :  { %441 = vrot.lane.b32.xlu1 %v439_v49, %s998_s30 }
 0x9dc   :  { %v442_v50 = vpop.permute.xlu1 %441 }
 0x9dd   :  { %v444_v51 = vadd.f32 %v442_v50, %v1088_v23 }
 0x9df   :  { %969 = vtanh.f32 %v444_v51 }
 0x9ec   :  { %v970_v52 = vpop.eup %969 }
 0x9ed   :  { %448 = vrot.lane.b32.xlu0 %v970_v52, %s999_s3 }
 0xa5f   :  { %v449_v55 = vpop.permute.xlu0 %448 }
 0xa60   :  { %v451_v57 = vmul.f32 %v449_v55, %v446_v53 }
 0xa62   :  { %v1153_v58 = vadd.f32 %v454_v56, %v451_v57 }
 0xa64   :  { %v463_v59 = vpack.c.bf16 %v1153_v58, %v1153_v58  ;;  %v535_v18 = vrot.slane %v1153_v58, 6 }
 0xa66   :  { %v465_v60 = vrot.slane %v463_v59, 3 }
 0xa68   :  { %466 = vrot.lane.b32.xlu1 %v465_v60, %s999_s3 }
 0xada   :  { %v467_v61 = vpop.permute.xlu1 %466 }
 0xadb   :  { %908 = vmatmul.mubr.msk.bf16.vlgmr.msra.gmra.mxu0 %vm133_vm4, %v467_v61 }
 0xadc   :  { %920 = vmatpush3.bf16.msra.mxu0 %v1035_v4  ;;  %923 = vmatprep.mubr.msk.bf16.mxu0 %vm997_vm0, %v996_v3 }
 0xadd   :  { %921 = vmatprep.subr.bf16.mxu0 %v996_v3 }
 0xae0   :  { %922 = vmatpush3.bf16.msra.mxu0 %v1042_v5 }
 0xb9b   :  { %v505_v23 = vpop.f32.mrf.mxu0 }
 0xb9c   :  { %v506_v62 = vadd.f32 %v1084_v17, %v505_v23 }
 0xb9d   :  { %v909_v63 = vpop.f32.mrf.mxu0 }
 0xb9e   :  { %519 = vrot.lane.b32.xlu0 %v506_v62, %s998_s30  ;;  %v511_v6 = vadd.f32 %v506_v62, %v1091_v27 }
 0xb9f   :  { %v508_v0 = vpop.f32.mrf.mxu0 }
 0xba0   :  { %v819_v7 = vmul.f32 -1.442695, %v511_v6 }
 0xba1   :  { %v910_v2 = vpop.f32.mrf.mxu0 }
 0xba2   :  { %971 = vpow2.f32 %v819_v7 }
 0xbaf   :  { %v972_v8 = vpop.eup %971 }
 0xbb0   :  { %v515_v9 = vadd.f32 1.0, %v972_v8 }
 0xbb2   :  { %973 = vrcp.f32 %v515_v9 }
 0xbbf   :  { %v974_v10 = vpop.eup %973 }
 0xbc0   :  { %v529_v16 = vsub.f32 1.0, %v974_v10  ;;  %v537_v20 = vmul.f32 %v974_v10, %v535_v18 }
 0xc10   :  { %v520_v11 = vpop.permute.xlu0 %519 }
 0xc11   :  { %v522_v12 = vmul.f32 %v974_v10, %v520_v11 }
 0xc13   :  { %524 = vrot.lane.b32.xlu1 %v522_v12, %s998_s30 }
 0xc85   :  { %v525_v13 = vpop.permute.xlu1 %524 }
 0xc86   :  { %v527_v14 = vadd.f32 %v525_v13, %v1091_v27 }
 0xc88   :  { %975 = vtanh.f32 %v527_v14 }
 0xc95   :  { %v976_v15 = vpop.eup %975 }
 0xc96   :  { %531 = vrot.lane.b32.xlu0 %v976_v15, %s999_s3 }
 0xd08   :  { %v532_v19 = vpop.permute.xlu0 %531 }
 0xd09   :  { %v534_v21 = vmul.f32 %v532_v19, %v529_v16 }
 0xd0b   :  { %v1171_v22 = vadd.f32 %v537_v20, %v534_v21 }
 0xd0d   :  { %v545_v24 = vpack.c.bf16 %v1171_v22, %v1171_v22  ;;  %v618_v43 = vrot.slane %v1171_v22, 6 }
 0xd0f   :  { %547 = vrot.lane.b32.xlu1 %v545_v24, %s999_s3 }
 0xd81   :  { %v548_v25 = vpop.permute.xlu1 %547 }
 0xd82   :  { %916 = vmatmul.mubr.msk.bf16.vlgmr.msra.gmra.mxu1 %vm133_vm4, %v548_v25 }
 0xd83   :  { %928 = vmatpush3.bf16.msra.mxu1 %v1035_v4  ;;  %931 = vmatprep.mubr.msk.bf16.mxu1 %vm997_vm0, %v996_v3 }
 0xd84   :  { %929 = vmatprep.subr.bf16.mxu1 %v996_v3 }
 0xd87   :  { %930 = vmatpush3.bf16.msra.mxu1 %v1042_v5 }
 0xe42   :  { %v586_v26 = vpop.f32.mrf.mxu1 }
 0xe43   :  { %v587_v28 = vadd.f32 %v1084_v17, %v586_v26 }
 0xe44   :  { %v917_v29 = vpop.f32.mrf.mxu1 }
 0xe45   :  { %v593_v30 = vrot.slane %v587_v28, 6 }
 0xe46   :  { %v589_v31 = vpop.f32.mrf.mxu1 }
 0xe47   :  { %602 = vrot.lane.b32.xlu0 %v593_v30, %s998_s30  ;;  %v595_v34 = vadd.f32 %v593_v30, %v1091_v27 }
 0xe48   :  { %v918_v33 = vpop.f32.mrf.mxu1 }
 0xe49   :  { %v822_v35 = vmul.f32 -1.442695, %v595_v34 }
 0xe4b   :  { %977 = vpow2.f32 %v822_v35 }
 0xe58   :  { %v978_v4 = vpop.eup %977 }
 0xe59   :  { %v599_v36 = vadd.f32 1.0, %v978_v4 }
 0xe5b   :  { %979 = vrcp.f32 %v599_v36 }
 0xe68   :  { %v980_v37 = vpop.eup %979 }
 0xe69   :  { %v612_v42 = vsub.f32 1.0, %v980_v37  ;;  %v620_v45 = vmul.f32 %v980_v37, %v618_v43 }
 0xeb9   :  { %v603_v3 = vpop.permute.xlu0 %602 }
 0xeba   :  { %v605_v38 = vmul.f32 %v980_v37, %v603_v3 }
 0xebc   :  { %607 = vrot.lane.b32.xlu1 %v605_v38, %s998_s30 }
 0xf2e   :  { %v608_v5 = vpop.permute.xlu1 %607 }
 0xf2f   :  { %v610_v39 = vadd.f32 %v608_v5, %v1091_v27 }
 0xf31   :  { %981 = vtanh.f32 %v610_v39 }
 0xf3e   :  { %v982_v40 = vpop.eup %981 }
 0xf3f   :  { %614 = vrot.lane.b32.xlu0 %v982_v40, %s999_s3 }
 0xfb1   :  { %v615_v44 = vpop.permute.xlu0 %614 }
 0xfb2   :  { %v617_v46 = vmul.f32 %v615_v44, %v612_v42 }
 0xfb4   :  { %v1189_v47 = vadd.f32 %v620_v45, %v617_v46 }
 0xfb6   :  { %v628_v48 = vpack.c.bf16 %v1189_v47, %v1189_v47  ;;  %v702_v8 = vrot.slane %v1189_v47, 6 }
 0xfb8   :  { %v630_v49 = vrot.slane %v628_v48, 1 }
 0xfba   :  { %631 = vrot.lane.b32.xlu1 %v630_v49, %s999_s3 }
0x102c   :  { %v632_v50 = vpop.permute.xlu1 %631 }
0x102d   :  { %924 = vmatmul.mubr.msk.bf16.vlgmr.msra.gmra.mxu0 %vm133_vm4, %v632_v50 }
0x10ed   :  { %v670_v51 = vpop.f32.mrf.mxu0 }
0x10ee   :  { %v671_v52 = vadd.f32 %v1084_v17, %v670_v51 }
0x10ef   :  { %v925_v53 = vpop.f32.mrf.mxu0 }
0x10f0   :  { %v677_v54 = vrot.slane %v671_v52, 4 }
0x10f1   :  { %v673_v55 = vpop.f32.mrf.mxu0 }
0x10f2   :  { %686 = vrot.lane.b32.xlu0 %v677_v54, %s998_s30  ;;  %v679_v57 = vadd.f32 %v677_v54, %v1091_v27 }
0x10f3   :  { %v926_v56 = vpop.f32.mrf.mxu0 }
0x10f4   :  { %v825_v59 = vmul.f32 -1.442695, %v679_v57 }
0x10f6   :  { %983 = vpow2.f32 %v825_v59 }
0x1103   :  { %v984_v60 = vpop.eup %983 }
0x1104   :  { %v683_v61 = vadd.f32 1.0, %v984_v60 }
0x1106   :  { %985 = vrcp.f32 %v683_v61 }
0x1113   :  { %v986_v23 = vpop.eup %985 }
0x1114   :  { %v696_v7 = vsub.f32 1.0, %v986_v23  ;;  %v704_v10 = vmul.f32 %v986_v23, %v702_v8 }
0x1164   :  { %v687_v62 = vpop.permute.xlu0 %686 }
0x1165   :  { %v689_v63 = vmul.f32 %v986_v23, %v687_v62 }
0x1167   :  { %691 = vrot.lane.b32.xlu1 %v689_v63, %s998_s30 }
0x11d9   :  { %v692_v0 = vpop.permute.xlu1 %691 }
0x11da   :  { %v694_v2 = vadd.f32 %v692_v0, %v1091_v27 }
0x11dc   :  { %987 = vtanh.f32 %v694_v2 }
0x11e9   :  { %v988_v6 = vpop.eup %987 }
0x11ea   :  { %698 = vrot.lane.b32.xlu0 %v988_v6, %s999_s3 }
0x125c   :  { %v699_v9 = vpop.permute.xlu0 %698 }
0x125d   :  { %v701_v11 = vmul.f32 %v699_v9, %v696_v7 }
0x125f   :  { %v705_v12 = vadd.f32 %v704_v10, %v701_v11 }
0x1261   :  { %v712_v13 = vpack.c.bf16 %v705_v12, %v705_v12  ;;  %v786_v36 = vrot.slane %v705_v12, 6 }
0x1263   :  { %v714_v14 = vrot.slane %v712_v13, 2 }
0x1265   :  { %715 = vrot.lane.b32.xlu1 %v714_v14, %s999_s3 }
0x12d7   :  { %v716_v15 = vpop.permute.xlu1 %715 }
0x12d8   :  { %932 = vmatmul.mubr.msk.bf16.vlgmr.msra.gmra.mxu1 %vm133_vm4, %v716_v15 }
0x1398   :  { %v754_v16 = vpop.f32.mrf.mxu1 }
0x1399   :  { %v755_v18 = vadd.f32 %v1084_v17, %v754_v16 }
0x139a   :  { %v933_v19 = vpop.f32.mrf.mxu1 }
0x139b   :  { %v761_v20 = vrot.slane %v755_v18, 2 }
0x139c   :  { %v757_v21 = vpop.f32.mrf.mxu1 }
0x139d   :  { %770 = vrot.lane.b32.xlu0 %v761_v20, %s998_s30  ;;  %v763_v25 = vadd.f32 %v761_v20, %v1091_v27 }
0x139e   :  { %v934_v24 = vpop.f32.mrf.mxu1 }
0x139f   :  { %v828_v26 = vmul.f32 -1.442695, %v763_v25 }
0x13a1   :  { %989 = vpow2.f32 %v828_v26 }
0x13ae   :  { %v990_v28 = vpop.eup %989 }
0x13af   :  { %v767_v29 = vadd.f32 1.0, %v990_v28 }
0x13b1   :  { %991 = vrcp.f32 %v767_v29 }
0x13be   :  { %v992_v30 = vpop.eup %991 }
0x13bf   :  { %v780_v4 = vsub.f32 1.0, %v992_v30  ;;  %v788_v3 = vmul.f32 %v992_v30, %v786_v36 }
0x140f   :  { %v771_v31 = vpop.permute.xlu0 %770 }
0x1410   :  { %v773_v33 = vmul.f32 %v992_v30, %v771_v31 }
0x1412   :  { %775 = vrot.lane.b32.xlu1 %v773_v33, %s998_s30 }
0x1416   :  { %204 = vrot.lane.b32.xlu1 %v1096_v41, %s999_s3 }
0x141a   :  { %372 = vrot.lane.b32.xlu1 %v1134_v32, %s999_s3 }
0x141e   :  { %540 = vrot.lane.b32.xlu1 %v1171_v22, %s999_s3 }
0x1422   :  { %707 = vrot.lane.b32.xlu1 %v705_v12, %s999_s3 }
0x1484   :  { %v776_v17 = vpop.permute.xlu1 %775 }
0x1485   :  { %v778_v34 = vadd.f32 %v776_v17, %v1091_v27 }
0x1487   :  { %993 = vtanh.f32 %v778_v34 }
0x1488   :  { %v205_v35 = vpop.permute.xlu1 %204 }
0x1489   :  { %208 = vst.msk [vmem:[%s1252_s4] sm:$0x3] %vm207_vm5, %v205_v35 }
0x148c   :  { %v373_v41 = vpop.permute.xlu1 %372 }
0x148d   :  { %814 = vst.msk [vmem:[%s1252_s4] sm:$0x30] %vm376_vm6, %v373_v41 }
0x1490   :  { %v541_v32 = vpop.permute.xlu1 %540 }
0x1491   :  { %820 = vst.msk [vmem:[%s1252_s4 + $0x8] sm:$0x3] %vm207_vm5, %v541_v32 }
0x1494   :  { %v994_v22 = vpop.eup %993  ;;  %v708_v27 = vpop.permute.xlu1 %707 }
0x1495   :  { %826 = vst.msk [vmem:[%s1252_s4 + $0x8] sm:$0x30] %vm376_vm6, %v708_v27  ;;  %782 = vrot.lane.b32.xlu0 %v994_v22, %s999_s3 }
0x1499   :  { %287 = vrot.lane.b32.xlu0 %v1115_v1, %s999_s3 }
0x149d   :  { %457 = vrot.lane.b32.xlu0 %v1153_v58, %s999_s3 }
0x14a1   :  { %623 = vrot.lane.b32.xlu0 %v1189_v47, %s999_s3 }
0x1507   :  { %v783_v37 = vpop.permute.xlu0 %782 }
0x1508   :  { %v785_v38 = vmul.f32 %v783_v37, %v780_v4 }
0x150a   :  { %v789_v5 = vadd.f32 %v788_v3, %v785_v38 }
0x150b   :  { %v288_v39 = vpop.permute.xlu0 %287 }
0x150c   :  { %811 = vst.msk [vmem:[%s1252_s4] sm:$0xc] %vm291_vm7, %v288_v39  ;;  %791 = vrot.lane.b32.xlu0 %v789_v5, %s999_s3 }
0x150f   :  { %v458_v1 = vpop.permute.xlu0 %457 }
0x1510   :  { %817 = vst.msk [vmem:[%s1252_s4] sm:$0xc0] %vm461_vm8, %v458_v1 }
0x1513   :  { %v624_v58 = vpop.permute.xlu0 %623 }
0x1514   :  { %823 = vst.msk [vmem:[%s1252_s4 + $0x8] sm:$0xc] %vm291_vm7, %v624_v58 }
0x157e   :  { %v792_v40 = vpop.permute.xlu0 %791 }
0x157f   :  { %829 = vst.msk [vmem:[%s1252_s4 + $0x8] sm:$0xc0] %vm461_vm8, %v792_v40 }

</bundles_post_ra>
